<compile_context>
chip_gen: v5e
topology: v5e:2x2
jax: 0.10.0
libtpu: 0.0.40
codegen_flags: <defaults>
</compile_context>

<pallas_src>
import numpy as np
import jax
import jax.numpy as jnp
from jax.experimental import pallas as pl
from jax.experimental.pallas import tpu as pltpu


# ----------------------------------------------------------------------------
# Host-side constant-filter construction (same algorithm as the torch code)
# ----------------------------------------------------------------------------
def _gram_schmidt_np(mat):
    """mat: (n, h*w) -> orthonormal rows (same projection loop as torch ref)."""
    out = []
    for v in mat:
        v = np.asarray(v, dtype=np.float64).copy()
        for u in out:
            v = v - (v * u).sum() / (u * u).sum() * u
        v = v / np.linalg.norm(v)
        out.append(v)
    return np.stack(out)


def initialize_orthogonal_filters_np(c, h, w, rand01):
    """rand01: (c, h*w) uniform randoms playing the role of torch.rand."""
    if h * w < c:
        n = c // (h * w)
        blocks = [_gram_schmidt_np(rand01[i * h * w:(i + 1) * h * w])
                  for i in range(n)]
        filt = np.concatenate(blocks, axis=0)
    else:
        filt = _gram_schmidt_np(rand01)
    return filt.reshape(c, h, w)


# ----------------------------------------------------------------------------
# Fold adaptive_avg_pool2d into an effective per-pixel filter (exact)
# ----------------------------------------------------------------------------
def _adaptive_pool_windows(in_size, out_size):
    starts = [(i * in_size) // out_size for i in range(out_size)]
    ends = [-(-((i + 1) * in_size) // out_size) for i in range(out_size)]  # ceil
    return starts, ends


def _effective_filter(filt_np, h_in, w_in):
    """compressed[b,c] = sum_{y,x} eff[c,y,x] * x[b,c,y,x], where eff folds
    torch's adaptive_avg_pool2d windows (exact, incl. non-divisible sizes)."""
    C, H, W = filt_np.shape
    if (h_in, w_in) == (H, W):
        return np.asarray(filt_np, dtype=np.float32).reshape(C, H * W)
    hs, he = _adaptive_pool_windows(h_in, H)
    ws, we = _adaptive_pool_windows(w_in, W)
    eff = np.zeros((C, h_in, w_in), dtype=np.float64)
    for i in range(H):
        for j in range(W):
            area = (he[i] - hs[i]) * (we[j] - ws[j])
            eff[:, hs[i]:he[i], ws[j]:we[j]] += filt_np[:, i, j, None, None] / area
    return eff.reshape(C, h_in * w_in).astype(np.float32)


# ----------------------------------------------------------------------------
# Pallas kernel: per (batch, channel-block) weighted reduction over H*W lanes
# ----------------------------------------------------------------------------
def _gram_compress_kernel(x_ref, f_ref, o_ref):
    # x: (1, C_BLK, HW)  f: (C_BLK, HW)  o: (1, 1, C_BLK, 1)
    prod = x_ref[0] * f_ref[...]                     # VPU elementwise, HW on lanes
    s = jnp.sum(prod, axis=-1, keepdims=True)        # XLU lane reduction -> (C_BLK, 1)
    o_ref[...] = s[None, None].astype(o_ref.dtype)


def _pick_c_block(C):
    # Largest multiple-of-8 divisor of C (<= 256) so big C tiles across the grid;
    # fall back to full C (block == full dim is always legal).
    if C % 8 == 0:
        for cand in (256, 128, 64, 32, 16, 8):
            if C % cand == 0:
                return cand
    return C


@jax.jit
def _compress_pallas(x3, eff):
    B, C, HW = x3.shape
    C_BLK = _pick_c_block(C)
    nj = C // C_BLK
    out = pl.pallas_call(
        _gram_compress_kernel,
        grid=(B, nj),
        in_specs=[
            pl.BlockSpec((1, C_BLK, HW), lambda b, j: (b, j, 0)),
            pl.BlockSpec((C_BLK, HW), lambda b, j: (j, 0)),
        ],
        out_specs=pl.BlockSpec((1, 1, C_BLK, 1), lambda b, j: (b, j, 0, 0)),
        out_shape=jax.ShapeDtypeStruct((B, nj, C_BLK, 1), jnp.float32),
        compiler_params=pltpu.CompilerParams(
            dimension_semantics=("parallel", "parallel")),
    )(x3, eff)
    return out.reshape(B, C, 1, 1)


def gram_schmidt_transform_forward(x, constant_filter):
    """x: (B, C, h, w) f32 jnp array; constant_filter: (C, H, W) numpy f32.
    Returns (B, C, 1, 1), matching the torch module's forward()."""
    B, C, h, w = x.shape
    Cf, H, W = constant_filter.shape
    assert C == Cf, "channel count must match the constant filter"
    # TODO(synk): if this block is stacked per-layer, prefetch the effective
    # filter of layer L+1 behind layer L's compute (cross-call P10 pattern).
    eff = jnp.asarray(_effective_filter(np.asarray(constant_filter), h, w))
    x3 = x.reshape(B, C, h * w)          # layout-only reshape; HW goes on lanes
    return _compress_pallas(x3, eff)


# ----------------------------------------------------------------------------
# Pure-numpy reference mirroring the torch forward (f64)
# ----------------------------------------------------------------------------
def reference_forward_np(x, filt):
    B, C, h, w = x.shape
    _, H, W = filt.shape
    if (h, w) != (H, W):
        hs, he = _adaptive_pool_windows(h, H)
        ws, we = _adaptive_pool_windows(w, W)
        pooled = np.zeros((B, C, H, W), dtype=np.float64)
        for i in range(H):
            for j in range(W):
                pooled[:, :, i, j] = x[:, :, hs[i]:he[i], ws[j]:we[j]].mean(axis=(-1, -2))
    else:
        pooled = x
    return (filt[None] * pooled).sum(axis=(-1, -2), keepdims=True)


if __name__ == "__main__":
    B, C, Hf = 2, 64, 8                      # filter: (64, 8, 8)
    key = jax.random.PRNGKey(0)
    kx, kf = jax.random.split(key)

    rand01 = np.asarray(jax.random.uniform(kf, (C, Hf * Hf)), dtype=np.float64)
    constant_filter = initialize_orthogonal_filters_np(C, Hf, Hf, rand01).astype(np.float32)

    # Case 1: input spatial (16x16) != filter spatial (8x8)
    #   -> adaptive_avg_pool2d path, folded exactly into the effective filter.
    x_big = jax.random.normal(kx, (B, C, 16, 16), dtype=jnp.float32)
    y_big = jax.block_until_ready(gram_schmidt_transform_forward(x_big, constant_filter))
    ref_big = reference_forward_np(np.asarray(x_big, np.float64),
                                   constant_filter.astype(np.float64))
    np.testing.assert_allclose(np.asarray(y_big), ref_big, rtol=1e-4, atol=1e-4)

    # Case 2: input spatial == filter spatial -> direct weighted-sum path.
    x_eq = x_big[:, :, ::2, ::2]
    y_eq = jax.block_until_ready(gram_schmidt_transform_forward(x_eq, constant_filter))
    ref_eq = reference_forward_np(np.asarray(x_eq, np.float64),
                                  constant_filter.astype(np.float64))
    np.testing.assert_allclose(np.asarray(y_eq), ref_eq, rtol=1e-4, atol=1e-4)

    assert y_big.shape == (B, C, 1, 1) and y_eq.shape == (B, C, 1, 1)
    assert bool(jnp.all(jnp.isfinite(y_big))) and bool(jnp.all(jnp.isfinite(y_eq)))
    print("KERNEL_OK")
</pallas_src>

<mosaic_0001>
module attributes {stable_mosaic.version = 11 : i64} {
  func.func @_gram_compress_kernel(%arg0: i32, %arg1: i32, %arg2: memref<1x64x256xf32, #tpu.memory_space<vmem>>, %arg3: memref<64x256xf32, #tpu.memory_space<vmem>>, %arg4: memref<1x1x64x1xf32, #tpu.memory_space<vmem>>) attributes {dimension_semantics = [#tpu.dimension_semantics<parallel>, #tpu.dimension_semantics<parallel>], iteration_bounds = array<i64: 2, 1>, scalar_prefetch = 0 : i64, scratch_operands = 0 : i64, tpu.core_type = #tpu.core_type<tc>, window_params = [{transform_indices = @transform_0, window_bounds = array<i64: 1, 64, 256>}, {transform_indices = @transform_1, window_bounds = array<i64: 64, 256>}, {transform_indices = @transform_2, window_bounds = array<i64: 1, 1, 64, 1>}]} {
    %c0 = arith.constant 0 : index
    %c0_0 = arith.constant 0 : index
    %c0_1 = arith.constant 0 : index
    %0 = vector.load %arg2[%c0, %c0_0, %c0_1] : memref<1x64x256xf32, #tpu.memory_space<vmem>>, vector<1x64x256xf32>
    %1 = vector.shape_cast %0 : vector<1x64x256xf32> to vector<64x256xf32>
    %c0_2 = arith.constant 0 : index
    %c0_3 = arith.constant 0 : index
    %2 = vector.load %arg3[%c0_2, %c0_3] : memref<64x256xf32, #tpu.memory_space<vmem>>, vector<64x256xf32>
    %3 = arith.mulf %1, %2 : vector<64x256xf32>
    %cst = arith.constant dense<0.000000e+00> : vector<64xf32>
    %4 = vector.multi_reduction <add>, %3, %cst [1] : vector<64x256xf32> to vector<64xf32>
    %5 = vector.shape_cast %4 : vector<64xf32> to vector<64x1xf32>
    %6 = vector.shape_cast %5 : vector<64x1xf32> to vector<1x1x64x1xf32>
    %c0_4 = arith.constant 0 : index
    %c0_5 = arith.constant 0 : index
    %c0_6 = arith.constant 0 : index
    %c0_7 = arith.constant 0 : index
    %7 = vector.load %arg4[%c0_4, %c0_5, %c0_6, %c0_7] : memref<1x1x64x1xf32, #tpu.memory_space<vmem>>, vector<1x1x64x1xf32>
    tpu.vector_store %arg4[%c0_4, %c0_5, %c0_6, %c0_7], %6 {strides = array<i32>} : memref<1x1x64x1xf32, #tpu.memory_space<vmem>>, vector<1x1x64x1xf32>,
    return
  }
  func.func @transform_0(%arg0: i32, %arg1: i32) -> (i32, i32, i32) {
    %c0_i32 = arith.constant 0 : i32
    %c0_i32_0 = arith.constant 0 : i32
    return %arg0, %arg1, %c0_i32 : i32, i32, i32
  }
  func.func @transform_1(%arg0: i32, %arg1: i32) -> (i32, i32) {
    %c0_i32 = arith.constant 0 : i32
    %c0_i32_0 = arith.constant 0 : i32
    return %arg1, %c0_i32 : i32, i32
  }
  func.func @transform_2(%arg0: i32, %arg1: i32) -> (i32, i32, i32, i32) {
    %c0_i32 = arith.constant 0 : i32
    %c0_i32_0 = arith.constant 0 : i32
    %c0_i32_1 = arith.constant 0 : i32
    return %arg0, %arg1, %c0_i32, %c0_i32_0 : i32, i32, i32, i32
  }
}

</mosaic_0001>

<bundles_post_ra>
// kernel: _compress_pallas.1
= control target key start
LH: loop header
LB: loop body
LE: loop exit
PB: predicated region body
PF: predicated region fallthrough
CT: control target
= control target key end

     0   :  { %7 = vsyncpa [#allocation3], 0  ;;  %s768_s0 = inlined_call_operand.hbm [shape: f32[2,64,256], index: 0, kind: input, shape index: {}]   ;;  %s769_s1 = inlined_call_operand.hbm [shape: f32[64,256], index: 1, kind: input, shape index: {}]   ;;  %s770_s2 = inlined_call_operand.vmem [shape: f32[2,1,64,1], index: 2, kind: output, shape index: {}]  }
   0x1   :  { %9 = vsyncpa [#allocation3 + $0x1], 0 }
   0x2   :  { %10 = vsyncpa [#allocation5], 0  ;;  %s631_s9 = smov 0   ;;  %s633_s10 = smov 0  }
   0x3   :  { %s635_s11 = smov 0   ;;  %s637_s12 = smov 0  }
   0x4   :  { %s639_s13 = smov 0   ;;  %s641_s14 = smov 0  }
   0x5 LB: > { %s412_s15 = sadd.s32 4294967295, %s611_s14   ;;  %p50_p0 = scmp.ne.s32.totalorder %s595_s10, %s591_s9  ;;  %s611_s14 = sphi %s641_s14, %s16_s14   ;;  %s607_s13 = sphi %s639_s13, %s779_s13   ;;  %s603_s12 = sphi %s637_s12, %s778_s12   ;;  %s599_s11 = sphi %s635_s11, %s777_s11   ;;  %s595_s10 = sphi %s633_s10, %s776_s10   ;;  %s591_s9 = sphi %s631_s9, %s775_s9  }
   0x6   : > { %p661_p1 = scmp.eq.s32.totalorder %s412_s15, 0  ;;  %p414_p2 = scmp.ge.s32.totalorder %s611_s14, 1 }
   0x7   : > { %p115_p3 = scmp.lt.s32.totalorder %s611_s14, 3  ;;  %s130_s20 = sshll.u32 %s769_s1, 4  ;;  %s131_s20 = int_to_ptr.hbm [resolvable:$true] %s130_s20 }
   0x8   : > { %p669_p4 = por %p661_p1, %p50_p0  ;;  %s613_s22 = smov [#allocation4]  }
   0x9   : > { %p676_p5 = pnand %p414_p2, %p115_p3  ;;  %s132_s23 = sshll.u32 %s613_s22, 4  ;;  %s133_s23 = int_to_ptr.vmem [resolvable:$true] %s132_s23 }
   0xa   : > { %s614_s24 = smov 256   ;;  %s615_s25 = smov 16  }
   0xb   : > { %p435_p6 = pneg %p676_p5  ;;  %s28_s26 = sadd.s32 1, %s607_s13 }
   0xc   : > { %p30_p8 = scmp.ge.s32.totalorder %s28_s26, 2  ;;  %p44_p9 = scmp.ne.s32.totalorder %s599_s11, %s595_s10 }
   0xd   : > { %p436_p7 = pnand %p435_p6, %p661_p1  ;;  %p45_p10 = scmp.eq.s32.totalorder %s611_s14, 0 }
   0xe   : > { %s781_s26 = smov (%p30_p8, %s28_s26), 0  ;;  %s37_s27 = sadd.s32 1, %s599_s11 }
   0xf   : > { %438 = dma.hbm_to_vmem [thread:$0]  (!%p436_p7), %s131_s20, 2048, %s133_s23, [#allocation5], %s614_s24, %s614_s24, %s615_s25  }
  0x10   : > { %p691_p11 = por %p45_p10, %p44_p9  ;;  %s32_s29 = ssub.s32 %s607_s13, %s781_s26 }
  0x11   : > { %s146_s30 = sand.u32 1, %s599_s11   ;;  %p35_p12 = scmp.eq.s32.totalorder %s32_s29, 0 }
  0x12   : > { %p444_p13 = scmp.lt.s32.totalorder %s611_s14, 2  ;;  %s417_s3 = sshll.u32 %s146_s30, 7 }
  0x13   : > { %s427_s4 = sshll.u32 %s607_s13, 7  ;;  %s150_s15 = scalar_lea.vmem [#allocation2], %s417_s3 }
  0x14   : > { %s701_s5 = scalar_select %p35_p12, %s599_s11, %s37_s27  }
  0x15   : > { %s158_s8 = scalar_lea.hbm %s768_s0, %s427_s4  ;;  %s161_s18 = sshll.u32 %s150_s15, 4  ;;  %s162_s18 = int_to_ptr.vmem [resolvable:$true] %s161_s18 }
  0x16   : > { %s159_s9 = sshll.u32 %s158_s8, 4  ;;  %p440_p0 = pnand %p444_p13, %p691_p11  ;;  %s160_s9 = int_to_ptr.hbm [resolvable:$true] %s159_s9 }
  0x17   : > { %s147_s19 = scalar_lea.sflag [#allocation3], %s146_s30  ;;  %173 = sbr.rel (%p676_p5) target bundleno = 172 (0xac), region = 28 }
  0x18   : > { %442 = dma.hbm_to_vmem [thread:$0]  (!%p440_p0), %s160_s9, 2048, %s162_s18, %s147_s19, %s614_s24, %s614_s24, %s615_s25  }
  0x19   : > { %s175_s20 = sand.u32 (!%p676_p5), 1, %s595_s10  }
  0x1a   : > { %s421_s22 = sshll.u32 (!%p676_p5), %s175_s20, 7  ;;  %s176_s23 = scalar_lea.sflag (!%p676_p5), [#allocation3], %s175_s20 }
  0x1b   : > { %s711_s27 = scalar_lea.vmem (!%p676_p5), [#allocation2], %s421_s22 }
  0x1c   : > { %582 = dma.done.wait (%p669_p4), %s176_s23, 2048  }
  0x1d   : > { %584 = vsyncadd (%p669_p4), %s176_s23, 4294965248 }
  0x1e   : > { %586 = dma.done.wait (%p661_p1), [#allocation5], 2048  }
  0x1f   : > { %588 = vsyncadd (%p661_p1), [#allocation5], 4294965248  ;;  %v225_v0 = vld [vmem:[%s711_s27 + $0x20] sm:$0xff]  ;;  %v226_v1 = vld [vmem:[%s711_s27 + $0x28] sm:$0xff]  ;;  %p212_p1 = scmp.lt.s32.totalorder %s603_s12, 1  ;;  %vm293_vm0 = vcmask 7168  }
  0x20   : > { %v241_v2 = vld [vmem:[#allocation4 + $0x20] sm:$0xff]  ;;  %v242_v3 = vld [vmem:[#allocation4 + $0x28] sm:$0xff]  ;;  %v227_v19 = vld [vmem:[%s711_s27 + $0x30] sm:$0xff] }
  0x21   : > { %v257_v4 = vmul.f32 %v241_v2, %v225_v0  ;;  %v221_v5 = vld [vmem:[%s711_s27] sm:$0xff]  ;;  %v222_v6 = vld [vmem:[%s711_s27 + $0x8] sm:$0xff]  ;;  %v258_v7 = vmul.f32 %v242_v3, %v226_v1  ;;  %v228_v20 = vld [vmem:[%s711_s27 + $0x38] sm:$0xff]  ;;  %s783_s12 = smov (!%p212_p1, %s603_s12), 1 }
  0x22   : > { %v237_v8 = vld [vmem:[#allocation4] sm:$0xff]  ;;  %v238_v9 = vld [vmem:[#allocation4 + $0x8] sm:$0xff]  ;;  %v243_v21 = vld [vmem:[#allocation4 + $0x30] sm:$0xff]  ;;  %s428_s16 = sshll.u32 %s783_s12, 6 }
  0x23   : > { %v229_v10 = vld [vmem:[%s711_s27 + $0x40] sm:$0xff]  ;;  %v253_v11 = vmul.f32 %v237_v8, %v221_v5  ;;  %v254_v12 = vmul.f32 %v238_v9, %v222_v6  ;;  %v230_v13 = vld [vmem:[%s711_s27 + $0x48] sm:$0xff]  ;;  %v275_v16 = vadd.f32 %v258_v7, %v257_v4  ;;  %v244_v23 = vld [vmem:[#allocation4 + $0x38] sm:$0xff]  ;;  %v259_v27 = vmul.f32 %v243_v21, %v227_v19  ;;  %s220_s24 = scalar_lea.vmem %s770_s2, %s428_s16 }
  0x24   : > { %v245_v14 = vld [vmem:[#allocation4 + $0x40] sm:$0xff]  ;;  %v246_v15 = vld [vmem:[#allocation4 + $0x48] sm:$0xff]  ;;  %v223_v24 = vld [vmem:[%s711_s27 + $0x10] sm:$0xff]  ;;  %v260_v28 = vmul.f32 %v244_v23, %v228_v20 }
  0x25   : > { %v261_v17 = vmul.f32 %v245_v14, %v229_v10  ;;  %v262_v18 = vmul.f32 %v246_v15, %v230_v13  ;;  %v269_v22 = vadd.f32 %v254_v12, %v253_v11  ;;  %v224_v25 = vld [vmem:[%s711_s27 + $0x18] sm:$0xff]  ;;  %276 = vadd.xlane.f32.xlu1 %v275_v16  ;;  %v239_v29 = vld [vmem:[#allocation4 + $0x10] sm:$0xff]  ;;  %v233_v45 = vld [vmem:[%s711_s27 + $0x60] sm:$0xff] }
  0x26   : > { %v240_v30 = vld [vmem:[#allocation4 + $0x18] sm:$0xff]  ;;  %v231_v31 = vld [vmem:[%s711_s27 + $0x50] sm:$0xff]  ;;  %v255_v32 = vmul.f32 %v239_v29, %v223_v24  ;;  %v278_v39 = vadd.f32 %v260_v28, %v259_v27  ;;  %v234_v47 = vld [vmem:[%s711_s27 + $0x68] sm:$0xff] }
  0x27   : > { %v281_v26 = vadd.f32 %v262_v18, %v261_v17  ;;  %270 = vadd.xlane.f32.xlu0 %v269_v22  ;;  %v256_v33 = vmul.f32 %v240_v30, %v224_v25  ;;  %v232_v34 = vld [vmem:[%s711_s27 + $0x58] sm:$0xff]  ;;  %v247_v35 = vld [vmem:[#allocation4 + $0x50] sm:$0xff]  ;;  %v249_v48 = vld [vmem:[#allocation4 + $0x60] sm:$0xff] }
  0x28   : > { %v248_v36 = vld [vmem:[#allocation4 + $0x58] sm:$0xff]  ;;  %v263_v37 = vmul.f32 %v247_v35, %v231_v31  ;;  %v235_v40 = vld [vmem:[%s711_s27 + $0x70] sm:$0xff]  ;;  %v250_v49 = vld [vmem:[#allocation4 + $0x68] sm:$0xff]  ;;  %v265_v52 = vmul.f32 %v249_v48, %v233_v45 }
  0x29   : > { %282 = vadd.xlane.f32.xlu2 %v281_v26  ;;  %v264_v38 = vmul.f32 %v248_v36, %v232_v34  ;;  %v236_v41 = vld [vmem:[%s711_s27 + $0x78] sm:$0xff]  ;;  %v272_v42 = vadd.f32 %v256_v33, %v255_v32  ;;  %v251_v43 = vld [vmem:[#allocation4 + $0x70] sm:$0xff]  ;;  %v266_v53 = vmul.f32 %v250_v49, %v234_v47 }
  0x2a   : > { %v252_v44 = vld [vmem:[#allocation4 + $0x78] sm:$0xff]  ;;  %v267_v50 = vmul.f32 %v251_v43, %v235_v40 }
  0x2b   : > { %v284_v46 = vadd.f32 %v264_v38, %v263_v37  ;;  %v268_v51 = vmul.f32 %v252_v44, %v236_v41  ;;  %v287_v55 = vadd.f32 %v266_v53, %v265_v52 }
  0x2d   : > { %279 = vadd.xlane.f32.xlu1 %v278_v39  ;;  %v290_v54 = vadd.f32 %v268_v51, %v267_v50 }
  0x2f   : > { %273 = vadd.xlane.f32.xlu0 %v272_v42 }
  0x31   : > { %285 = vadd.xlane.f32.xlu2 %v284_v46 }
  0x35   : > { %291 = vadd.xlane.f32.xlu1 %v290_v54 }
  0x37   : > { %288 = vadd.xlane.f32.xlu0 %v287_v55 }
  0x98   : > { %v277_v56 = vpop.xlane.xlu1 %276 }
  0x99   : > { %296 = vst.msk [vmem:[%s220_s24 + $0x10] sm:$0xff] %vm293_vm0, %v277_v56 }
  0x9a   : > { %v271_v57 = vpop.xlane.xlu0 %270 }
  0x9b   : > { %294 = vst.msk [vmem:[%s220_s24] sm:$0xff] %vm293_vm0, %v271_v57 }
  0x9c   : > { %v283_v58 = vpop.xlane.xlu2 %282 }
  0x9d   : > { %298 = vst.msk [vmem:[%s220_s24 + $0x20] sm:$0xff] %vm293_vm0, %v283_v58 }
  0xa0   : > { %v280_v59 = vpop.xlane.xlu1 %279 }
  0xa1   : > { %297 = vst.msk [vmem:[%s220_s24 + $0x18] sm:$0xff] %vm293_vm0, %v280_v59 }
  0xa2   : > { %v274_v60 = vpop.xlane.xlu0 %273 }
  0xa3   : > { %295 = vst.msk [vmem:[%s220_s24 + $0x8] sm:$0xff] %vm293_vm0, %v274_v60 }
  0xa4   : > { %v286_v61 = vpop.xlane.xlu2 %285 }
  0xa5   : > { %299 = vst.msk [vmem:[%s220_s24 + $0x28] sm:$0xff] %vm293_vm0, %v286_v61 }
  0xa8   : > { %v292_v62 = vpop.xlane.xlu1 %291 }
  0xa9   : > { %301 = vst.msk [vmem:[%s220_s24 + $0x38] sm:$0xff] %vm293_vm0, %v292_v62 }
  0xaa   : > { %v289_v63 = vpop.xlane.xlu0 %288 }
  0xab   : > { %300 = vst.msk [vmem:[%s220_s24 + $0x30] sm:$0xff] %vm293_vm0, %v289_v63 }
  0xac PF: > { %s16_s14 = sadd.s32 1, %s611_s14   ;;  %s775_s9 = smov %s595_s10 }
  0xad   : > { %p13_p2 = scmp.ge.s32.totalorder %s16_s14, 4   ;;  %s776_s10 = smov %s599_s11 }
  0xae   : > { %s777_s11 = smov %s701_s5  ;;  %s778_s12 = smov %s607_s13 }
  0xaf   : > { %s779_s13 = smov %s781_s26  ;;  %15 = sbr.rel (!%p13_p2) target bundleno = 5 (0x5), region = 73 }
  0xb4   :  { %331 = vsyncpa [#allocation3], 1 }
  0xb5   :  { %333 = vsyncpa [#allocation3 + $0x1], 1 }
  0xb6   :  { %334 = vsyncpa [#allocation5], 1 }

</bundles_post_ra>
